<compile_context>
chip_gen: v7x
topology: tpu7x:2x2x1
jax: 0.10.0
libtpu: 0.0.40
codegen_flags: <defaults>
</compile_context>

<pallas_src>
import functools

import jax
import jax.numpy as jnp
from jax import lax
from jax.experimental import pallas as pl
from jax.experimental.pallas import tpu as pltpu


def _make_dice_kernel(N, C, T, HW, tiles_per_slice, ignore_index, ragged):
    """Kernel over a (N, C, T) score tile; accumulates per-class partial sums."""

    def kernel(x_ref, lab_ref, i_ref, y_ref, z_ref):
        j = pl.program_id(1)

        @pl.when(j == 0)
        def _init():
            i_ref[...] = jnp.zeros_like(i_ref)
            y_ref[...] = jnp.zeros_like(y_ref)
            z_ref[...] = jnp.zeros_like(z_ref)

        s = x_ref[...].astype(jnp.float32)          # (N, C, T)  f32 compute
        lab = lab_ref[...]                          # (N, 1, T)  int32

        # Per-pixel mask sum over the batch: M[hw] = sum_b [lab != ignore].
        # (The PyTorch (N,1,H,W) ignore_mask broadcast against the (N,H,W)
        #  per-class score collapses exactly to this.)
        m = jnp.sum((lab != ignore_index).astype(jnp.float32),
                    axis=0, keepdims=True)          # (1, 1, T)

        if ragged:
            # Final partial HW tile: zero garbage lanes (stale VMEM may be
            # NaN/Inf when reinterpreted as float, so mask s as well as M).
            tile_idx = pl.program_id(0) * tiles_per_slice + j
            lane = lax.broadcasted_iota(jnp.int32, (1, 1, T), 2)
            valid = (tile_idx * T + lane) < HW      # (1, 1, T)
            m = jnp.where(valid, m, 0.0)
            s = jnp.where(valid, s, 0.0)

        # Class membership for every class at once (no explicit f32 one-hot).
        cls = lax.broadcasted_iota(jnp.int32, (N, C, T), 1)
        match = lab == cls                          # (N, C, T) bool

        sm = s * m                                  # s * M

        def _acc(v):                                # (N, C, T) -> (1, C, 1)
            v = jnp.sum(v, axis=2, keepdims=True)   # lane reduction
            return jnp.sum(v, axis=0, keepdims=True)  # batch reduction

        zero = jnp.float32(0.0)
        i_ref[...] += _acc(jnp.where(match, sm, zero))   # Σ s·t·M  (intersect)
        y_ref[...] += _acc(jnp.where(match, m, zero))    # Σ t·M    (t*t == t)
        z_ref[...] += _acc(s * sm)                       # Σ s²·M

    return kernel


@functools.partial(jax.jit, static_argnames=("n_classes", "ignore_index", "tile_hw"))
def pdloss_forward(inputs, target, *, n_classes, ignore_index, weight=None,
                   tile_hw=None):
    """inputs: (N, C, H, W) float (f32 or bf16); target: (N, 1, H, W) int labels."""
    N, C, H, W = inputs.shape
    assert C == n_classes, "predict & target shape do not match"
    HW = H * W

    x = inputs.reshape(N, C, HW)                         # free view, native dtype
    labels = target.reshape(N, 1, HW).astype(jnp.int32)  # (N, 1, HW)

    # HW tiling: lane tile is a multiple of 128 (or the full HW if it fits).
    bytes_per_lane = N * C * jnp.dtype(x.dtype).itemsize + N * 4
    if tile_hw is None:
        budget = 8 << 20                                 # per-window VMEM budget
        tile_hw = int(min(32768, max(128, (budget // bytes_per_lane) // 128 * 128)))
    else:
        tile_hw = max(128, (tile_hw // 128) * 128)

    tile = HW if HW <= tile_hw else tile_hw
    num_tiles = pl.cdiv(HW, tile)
    ragged = (HW % tile) != 0
    # Parallel split of the HW range (2 TensorCores on v7x; neutral elsewhere).
    num_par = 2 if (num_tiles % 2 == 0 and num_tiles >= 2) else 1
    tiles_per_slice = num_tiles // num_par

    # Explicit VMEM budget (v5e's default scoped limit is only 16 MiB).
    window = bytes_per_lane * tile                       # x block + label block
    vmem_limit = int(min(max(4 * window + (2 << 20), 32 << 20), 100 << 20))

    kernel = _make_dice_kernel(N, C, tile, HW, tiles_per_slice, ignore_index,
                               ragged)
    hw_idx = lambda p, j: p * tiles_per_slice + j

    part_i, part_y, part_z = pl.pallas_call(
        kernel,
        grid=(num_par, tiles_per_slice),
        in_specs=[
            pl.BlockSpec((N, C, tile), lambda p, j: (0, 0, hw_idx(p, j))),
            pl.BlockSpec((N, 1, tile), lambda p, j: (0, 0, hw_idx(p, j))),
        ],
        out_specs=(
            pl.BlockSpec((1, C, 1), lambda p, j: (p, 0, 0)),
            pl.BlockSpec((1, C, 1), lambda p, j: (p, 0, 0)),
            pl.BlockSpec((1, C, 1), lambda p, j: (p, 0, 0)),
        ),
        out_shape=(
            jax.ShapeDtypeStruct((num_par, C, 1), jnp.float32),
            jax.ShapeDtypeStruct((num_par, C, 1), jnp.float32),
            jax.ShapeDtypeStruct((num_par, C, 1), jnp.float32),
        ),
        compiler_params=pltpu.CompilerParams(
            dimension_semantics=("parallel", "arbitrary"),
            vmem_limit_bytes=vmem_limit),
    )(x, labels)

    intersect = jnp.sum(part_i[:, :, 0], axis=0)   # (C,)
    y_sum = jnp.sum(part_y[:, :, 0], axis=0)       # (C,)
    z_sum = jnp.sum(part_z[:, :, 0], axis=0)       # (C,)

    smooth = 1e-05
    dice = 1.0 - (2.0 * intersect + smooth) / (z_sum + y_sum + smooth)  # (C,)
    if weight is None:
        weight = [1.0] * n_classes
    w = jnp.asarray(weight, jnp.float32)
    return jnp.sum(dice * w) / n_classes


def pdloss_reference(inputs, target, *, n_classes, ignore_index, weight=None):
    """Plain-JAX replica of the PyTorch forward (incl. its broadcast behavior)."""
    ignore_mask = jnp.where(target == ignore_index, 0.0, 1.0)          # (N,1,H,W)
    onehot = jnp.concatenate(
        [(target == i).astype(jnp.float32) for i in range(n_classes)], axis=1)
    if weight is None:
        weight = [1.0] * n_classes
    smooth = 1e-05
    loss = 0.0
    for i in range(n_classes):
        s = inputs[:, i].astype(jnp.float32)                           # (N,H,W)
        t = onehot[:, i]                                               # (N,H,W)
        intersect = jnp.sum(s * t * ignore_mask)                       # bcast -> (N,N,H,W)
        y_sum = jnp.sum(t * t * ignore_mask)
        z_sum = jnp.sum(s * s * ignore_mask)
        dice = 1.0 - (2.0 * intersect + smooth) / (z_sum + y_sum + smooth)
        loss = loss + dice * weight[i]
    return loss / n_classes


if __name__ == "__main__":
    n_classes = 4
    ignore_index = 4          # labels equal to this value are masked out

    def run_case(case, N, H, W, dtype, tile_hw):
        key = jax.random.fold_in(jax.random.PRNGKey(0), case)
        k_in, k_tgt = jax.random.split(key)
        logits = jax.random.normal(k_in, (N, n_classes, H, W), dtype=jnp.float32)
        inputs = jax.nn.softmax(logits, axis=1).astype(dtype)
        target = jax.random.randint(k_tgt, (N, 1, H, W), 0, n_classes + 1,
                                    dtype=jnp.int32)

        loss = pdloss_forward(inputs, target, n_classes=n_classes,
                              ignore_index=ignore_index, tile_hw=tile_hw)
        loss = jax.block_until_ready(loss)
        loss_ref = pdloss_reference(inputs, target, n_classes=n_classes,
                                    ignore_index=ignore_index)
        assert jnp.allclose(loss, loss_ref, rtol=1e-5, atol=1e-6), \
            (case, loss, loss_ref)

    # 1) bf16 activations, adaptive tile -> single full-HW tile (P=1).
    run_case(0, 2, 16, 16, jnp.bfloat16, None)
    # 2) bf16, 4 HW tiles of 128 lanes -> exercises the parallel split (P=2)
    #    and in-kernel accumulation across tiles.
    run_case(1, 2, 16, 32, jnp.bfloat16, 128)
    # 3) f32, HW=360 with 128-lane tiles -> exercises the ragged-tile lane mask
    #    and the in-kernel ignore-mask sum on a partial tile.
    run_case(2, 2, 12, 30, jnp.float32, 128)

    print("KERNEL_OK")
</pallas_src>

<mosaic_0001>
module attributes {stable_mosaic.version = 11 : i64} {
  func.func @kernel(%arg0: i32, %arg1: i32, %arg2: memref<2x4x256xbf16, #tpu.memory_space<vmem>>, %arg3: memref<2x1x256xi32, #tpu.memory_space<vmem>>, %arg4: memref<1x4x1xf32, #tpu.memory_space<vmem>>, %arg5: memref<1x4x1xf32, #tpu.memory_space<vmem>>, %arg6: memref<1x4x1xf32, #tpu.memory_space<vmem>>) attributes {dimension_semantics = [#tpu.dimension_semantics<parallel>, #tpu.dimension_semantics<arbitrary>], iteration_bounds = array<i64: 1, 1>, scalar_prefetch = 0 : i64, scratch_operands = 0 : i64, tpu.core_type = #tpu.core_type<tc>, window_params = [{transform_indices = @transform_0, window_bounds = array<i64: 2, 4, 256>}, {transform_indices = @transform_1, window_bounds = array<i64: 2, 1, 256>}, {transform_indices = @transform_2, window_bounds = array<i64: 1, 4, 1>}, {transform_indices = @transform_3, window_bounds = array<i64: 1, 4, 1>}, {transform_indices = @transform_4, window_bounds = array<i64: 1, 4, 1>}]} {
    %c0_i32 = arith.constant 0 : i32
    %0 = arith.cmpi eq, %arg1, %c0_i32 : i32
    %1 = arith.extui %0 : i1 to i32
    %c0_i32_0 = arith.constant 0 : i32
    %2 = arith.cmpi ne, %1, %c0_i32_0 : i32
    scf.if %2 {
      %cst_32 = arith.constant 0.000000e+00 : f32
      %45 = vector.broadcast %cst_32 : f32 to vector<1x4x1xf32>
      %c0_33 = arith.constant 0 : index
      %c0_34 = arith.constant 0 : index
      %c0_35 = arith.constant 0 : index
      %46 = vector.load %arg4[%c0_33, %c0_34, %c0_35] : memref<1x4x1xf32, #tpu.memory_space<vmem>>, vector<1x4x1xf32>
      tpu.vector_store %arg4[%c0_33, %c0_34, %c0_35], %45 {strides = array<i32>} : memref<1x4x1xf32, #tpu.memory_space<vmem>>, vector<1x4x1xf32>,
      %cst_36 = arith.constant 0.000000e+00 : f32
      %47 = vector.broadcast %cst_36 : f32 to vector<1x4x1xf32>
      %c0_37 = arith.constant 0 : index
      %c0_38 = arith.constant 0 : index
      %c0_39 = arith.constant 0 : index
      %48 = vector.load %arg5[%c0_37, %c0_38, %c0_39] : memref<1x4x1xf32, #tpu.memory_space<vmem>>, vector<1x4x1xf32>
      tpu.vector_store %arg5[%c0_37, %c0_38, %c0_39], %47 {strides = array<i32>} : memref<1x4x1xf32, #tpu.memory_space<vmem>>, vector<1x4x1xf32>,
      %cst_40 = arith.constant 0.000000e+00 : f32
      %49 = vector.broadcast %cst_40 : f32 to vector<1x4x1xf32>
      %c0_41 = arith.constant 0 : index
      %c0_42 = arith.constant 0 : index
      %c0_43 = arith.constant 0 : index
      %50 = vector.load %arg6[%c0_41, %c0_42, %c0_43] : memref<1x4x1xf32, #tpu.memory_space<vmem>>, vector<1x4x1xf32>
      tpu.vector_store %arg6[%c0_41, %c0_42, %c0_43], %49 {strides = array<i32>} : memref<1x4x1xf32, #tpu.memory_space<vmem>>, vector<1x4x1xf32>,
    } else {
    }
    %c0 = arith.constant 0 : index
    %c0_1 = arith.constant 0 : index
    %c0_2 = arith.constant 0 : index
    %3 = vector.load %arg2[%c0, %c0_1, %c0_2] : memref<2x4x256xbf16, #tpu.memory_space<vmem>>, vector<2x4x256xbf16>
    %4 = arith.extf %3 : vector<2x4x256xbf16> to vector<2x4x256xf32>
    %c0_3 = arith.constant 0 : index
    %c0_4 = arith.constant 0 : index
    %c0_5 = arith.constant 0 : index
    %5 = vector.load %arg3[%c0_3, %c0_4, %c0_5] : memref<2x1x256xi32, #tpu.memory_space<vmem>>, vector<2x1x256xi32>
    %c4_i32 = arith.constant 4 : i32
    %6 = vector.broadcast %c4_i32 : i32 to vector<2x1x256xi32>
    %7 = arith.cmpi ne, %5, %6 : vector<2x1x256xi32>
    %8 = arith.extui %7 : vector<2x1x256xi1> to vector<2x1x256xi32>
    %9 = arith.sitofp %8 : vector<2x1x256xi32> to vector<2x1x256xf32>
    %cst = arith.constant dense<0.000000e+00> : vector<1x256xf32>
    %10 = vector.multi_reduction <add>, %9, %cst [0] : vector<2x1x256xf32> to vector<1x256xf32>
    %11 = vector.shape_cast %10 : vector<1x256xf32> to vector<1x1x256xf32>
    %12 = tpu.iota {dimensions = array<i32: 1>} : vector<2x4x256xi32>
    %13 = vector.broadcast %5 : vector<2x1x256xi32> to vector<2x4x256xi32>
    %14 = arith.cmpi eq, %13, %12 : vector<2x4x256xi32>
    %15 = vector.broadcast %11 : vector<1x1x256xf32> to vector<2x4x256xf32>
    %16 = arith.mulf %4, %15 : vector<2x4x256xf32>
    %c0_6 = arith.constant 0 : index
    %c0_7 = arith.constant 0 : index
    %c0_8 = arith.constant 0 : index
    %17 = vector.load %arg4[%c0_6, %c0_7, %c0_8] : memref<1x4x1xf32, #tpu.memory_space<vmem>>, vector<1x4x1xf32>
    %cst_9 = arith.constant 0.000000e+00 : f32
    %18 = vector.broadcast %cst_9 : f32 to vector<2x4x256xf32>
    %19 = arith.select %14, %16, %18 : vector<2x4x256xi1>, vector<2x4x256xf32>
    %cst_10 = arith.constant dense<0.000000e+00> : vector<2x4xf32>
    %20 = vector.multi_reduction <add>, %19, %cst_10 [2] : vector<2x4x256xf32> to vector<2x4xf32>
    %21 = vector.shape_cast %20 : vector<2x4xf32> to vector<2x4x1xf32>
    %cst_11 = arith.constant dense<0.000000e+00> : vector<4x1xf32>
    %22 = vector.multi_reduction <add>, %21, %cst_11 [0] : vector<2x4x1xf32> to vector<4x1xf32>
    %23 = vector.shape_cast %22 : vector<4x1xf32> to vector<1x4x1xf32>
    %24 = arith.addf %17, %23 : vector<1x4x1xf32>
    %c0_12 = arith.constant 0 : index
    %c0_13 = arith.constant 0 : index
    %c0_14 = arith.constant 0 : index
    %25 = vector.load %arg4[%c0_12, %c0_13, %c0_14] : memref<1x4x1xf32, #tpu.memory_space<vmem>>, vector<1x4x1xf32>
    tpu.vector_store %arg4[%c0_12, %c0_13, %c0_14], %24 {strides = array<i32>} : memref<1x4x1xf32, #tpu.memory_space<vmem>>, vector<1x4x1xf32>,
    %c0_15 = arith.constant 0 : index
    %c0_16 = arith.constant 0 : index
    %c0_17 = arith.constant 0 : index
    %26 = vector.load %arg5[%c0_15, %c0_16, %c0_17] : memref<1x4x1xf32, #tpu.memory_space<vmem>>, vector<1x4x1xf32>
    %cst_18 = arith.constant 0.000000e+00 : f32
    %27 = vector.shape_cast %11 : vector<1x1x256xf32> to vector<1x1x256xf32>
    %28 = vector.broadcast %27 : vector<1x1x256xf32> to vector<2x4x256xf32>
    %29 = vector.broadcast %cst_18 : f32 to vector<2x4x256xf32>
    %30 = arith.select %14, %28, %29 : vector<2x4x256xi1>, vector<2x4x256xf32>
    %cst_19 = arith.constant dense<0.000000e+00> : vector<2x4xf32>
    %31 = vector.multi_reduction <add>, %30, %cst_19 [2] : vector<2x4x256xf32> to vector<2x4xf32>
    %32 = vector.shape_cast %31 : vector<2x4xf32> to vector<2x4x1xf32>
    %cst_20 = arith.constant dense<0.000000e+00> : vector<4x1xf32>
    %33 = vector.multi_reduction <add>, %32, %cst_20 [0] : vector<2x4x1xf32> to vector<4x1xf32>
    %34 = vector.shape_cast %33 : vector<4x1xf32> to vector<1x4x1xf32>
    %35 = arith.addf %26, %34 : vector<1x4x1xf32>
    %c0_21 = arith.constant 0 : index
    %c0_22 = arith.constant 0 : index
    %c0_23 = arith.constant 0 : index
    %36 = vector.load %arg5[%c0_21, %c0_22, %c0_23] : memref<1x4x1xf32, #tpu.memory_space<vmem>>, vector<1x4x1xf32>
    tpu.vector_store %arg5[%c0_21, %c0_22, %c0_23], %35 {strides = array<i32>} : memref<1x4x1xf32, #tpu.memory_space<vmem>>, vector<1x4x1xf32>,
    %c0_24 = arith.constant 0 : index
    %c0_25 = arith.constant 0 : index
    %c0_26 = arith.constant 0 : index
    %37 = vector.load %arg6[%c0_24, %c0_25, %c0_26] : memref<1x4x1xf32, #tpu.memory_space<vmem>>, vector<1x4x1xf32>
    %38 = arith.mulf %4, %16 : vector<2x4x256xf32>
    %cst_27 = arith.constant dense<0.000000e+00> : vector<2x4xf32>
    %39 = vector.multi_reduction <add>, %38, %cst_27 [2] : vector<2x4x256xf32> to vector<2x4xf32>
    %40 = vector.shape_cast %39 : vector<2x4xf32> to vector<2x4x1xf32>
    %cst_28 = arith.constant dense<0.000000e+00> : vector<4x1xf32>
    %41 = vector.multi_reduction <add>, %40, %cst_28 [0] : vector<2x4x1xf32> to vector<4x1xf32>
    %42 = vector.shape_cast %41 : vector<4x1xf32> to vector<1x4x1xf32>
    %43 = arith.addf %37, %42 : vector<1x4x1xf32>
    %c0_29 = arith.constant 0 : index
    %c0_30 = arith.constant 0 : index
    %c0_31 = arith.constant 0 : index
    %44 = vector.load %arg6[%c0_29, %c0_30, %c0_31] : memref<1x4x1xf32, #tpu.memory_space<vmem>>, vector<1x4x1xf32>
    tpu.vector_store %arg6[%c0_29, %c0_30, %c0_31], %43 {strides = array<i32>} : memref<1x4x1xf32, #tpu.memory_space<vmem>>, vector<1x4x1xf32>,
    return
  }
  func.func @transform_0(%arg0: i32, %arg1: i32) -> (i32, i32, i32) {
    %c1_i32 = arith.constant 1 : i32
    %0 = arith.muli %arg0, %c1_i32 : i32
    %1 = arith.addi %0, %arg1 : i32
    %c0_i32 = arith.constant 0 : i32
    %c0_i32_0 = arith.constant 0 : i32
    %c0_i32_1 = arith.constant 0 : i32
    return %c0_i32, %c0_i32_0, %1 : i32, i32, i32
  }
  func.func @transform_1(%arg0: i32, %arg1: i32) -> (i32, i32, i32) {
    %c1_i32 = arith.constant 1 : i32
    %0 = arith.muli %arg0, %c1_i32 : i32
    %1 = arith.addi %0, %arg1 : i32
    %c0_i32 = arith.constant 0 : i32
    %c0_i32_0 = arith.constant 0 : i32
    %c0_i32_1 = arith.constant 0 : i32
    return %c0_i32, %c0_i32_0, %1 : i32, i32, i32
  }
  func.func @transform_2(%arg0: i32, %arg1: i32) -> (i32, i32, i32) {
    %c0_i32 = arith.constant 0 : i32
    %c0_i32_0 = arith.constant 0 : i32
    %c0_i32_1 = arith.constant 0 : i32
    return %arg0, %c0_i32, %c0_i32_0 : i32, i32, i32
  }
  func.func @transform_3(%arg0: i32, %arg1: i32) -> (i32, i32, i32) {
    %c0_i32 = arith.constant 0 : i32
    %c0_i32_0 = arith.constant 0 : i32
    %c0_i32_1 = arith.constant 0 : i32
    return %arg0, %c0_i32, %c0_i32_0 : i32, i32, i32
  }
  func.func @transform_4(%arg0: i32, %arg1: i32) -> (i32, i32, i32) {
    %c0_i32 = arith.constant 0 : i32
    %c0_i32_0 = arith.constant 0 : i32
    %c0_i32_1 = arith.constant 0 : i32
    return %arg0, %c0_i32, %c0_i32_0 : i32, i32, i32
  }
}

</mosaic_0001>

<bundles_post_ra>
// kernel: pdloss_forward.1
= control target key start
LH: loop header
LB: loop body
LE: loop exit
PB: predicated region body
PF: predicated region fallthrough
CT: control target
= control target key end

     0   :  { %v77_v0 = vlaneseq  ;;  %v240_v4 = vmov 0.0   ;;  %vm97_vm2 = vcmask 1040384   ;;  %vm151_vm7 = vcmask 1043456   ;;  %s363_s1 = inlined_call_operand.vmem [shape: s32[2,1,256], index: 1, kind: input, shape index: {}]   ;;  %s364_s0 = inlined_call_operand.vmem [shape: bf16[2,4,256], index: 0, kind: input, shape index: {}]   ;;  %s365_s3 = inlined_call_operand.vmem [shape: f32[1,4,1], index: 3, kind: output, shape index: {1}]   ;;  %s366_s2 = inlined_call_operand.vmem [shape: f32[1,4,1], index: 2, kind: output, shape index: {0}]   ;;  %s367_s4 = inlined_call_operand.vmem [shape: f32[1,4,1], index: 4, kind: output, shape index: {2}]  }
   0x1   :  { %v67_v1 = vld [vmem:[%s363_s1] sm:$0x3]  ;;  %v68_v2 = vld [vmem:[%s363_s1 + $0x2] sm:$0x3]  ;;  %vm59_vm8 = vcmask 3072  }
   0x2   :  { %vm69_vm0 = vcmp.ne.s32.totalorder %v67_v1, 4  ;;  %vm70_vm1 = vcmp.ne.s32.totalorder %v68_v2, 4  ;;  %v78_v3 = vshrl.u32 %v77_v0, 7  ;;  %v236_v23 = vld [vmem:[%s364_s0] sm:$0xff]   ;;  %61 = vst.msk [vmem:[%s365_s3] sm:$0xf] %vm59_vm8, %v240_v4 }
   0x3   :  { %v233_v5 = vsel %vm69_vm0, 1.0, %v240_v4  ;;  %v234_v6 = vsel %vm70_vm1, 1.0, %v240_v4  ;;  %v237_v30 = vunpack.c.l.bf16 %v236_v23  ;;  %v238_v31 = vunpack.c.h.bf16 %v236_v23  ;;  %60 = vst.msk [vmem:[%s366_s2] sm:$0xf] %vm59_vm8, %v240_v4  ;;  %62 = vst.msk [vmem:[%s367_s4] sm:$0xf] %vm59_vm8, %v240_v4 }
   0x4   :  { %v79_v7 = vsub.s32 0, %v78_v3  ;;  %v83_v8 = vsub.s32 1, %v78_v3 }
   0x6   :  { %v80_v9 = vrot.slane %v233_v5, %v79_v7  ;;  %v84_v10 = vrot.slane %v233_v5, %v83_v8  ;;  %v88_v11 = vrot.slane %v234_v6, %v79_v7  ;;  %v92_v12 = vrot.slane %v234_v6, %v83_v8 }
   0x7   :  { %v109_v13 = vrot.slane %v67_v1, %v79_v7  ;;  %v113_v14 = vrot.slane %v67_v1, %v83_v8  ;;  %v117_v15 = vrot.slane %v68_v2, %v79_v7  ;;  %v121_v16 = vrot.slane %v68_v2, %v83_v8 }
   0x8   :  { %v98_v17 = vsel %vm97_vm2, %v80_v9, 0.0  ;;  %v99_v18 = vsel %vm97_vm2, %v88_v11, 0.0  ;;  %v101_v19 = vsel %vm97_vm2, %v84_v10, 0.0  ;;  %v102_v20 = vsel %vm97_vm2, %v92_v12, 0.0 }
   0x9   :  { %v100_v21 = vadd.f32 %v99_v18, %v98_v17  ;;  %v103_v22 = vadd.f32 %v102_v20, %v101_v19  ;;  %vm277_vm3 = vcmp.eq.s32.totalorder %v109_v13, %v78_v3  ;;  %vm281_vm4 = vcmp.eq.s32.totalorder %v113_v14, %v78_v3 }
   0xa   :  { %vm285_vm5 = vcmp.eq.s32.totalorder %v117_v15, %v78_v3  ;;  %vm289_vm6 = vcmp.eq.s32.totalorder %v121_v16, %v78_v3  ;;  %v140_v14 = vld [vmem:[%s366_s2] sm:$0xf] }
   0xb   :  { %v129_v28 = vrot.slane %v100_v21, %v79_v7  ;;  %v133_v29 = vrot.slane %v103_v22, %v79_v7  ;;  %v168_v7 = vld [vmem:[%s365_s3] sm:$0xf] }
   0xc   :  { %v188_v20 = vld [vmem:[%s367_s4] sm:$0xf] }
   0xd   :  { %v169_v32 = vsel %vm277_vm3, %v129_v28, 0.0  ;;  %v170_v33 = vsel %vm281_vm4, %v133_v29, 0.0  ;;  %v171_v34 = vsel %vm285_vm5, %v129_v28, 0.0  ;;  %v172_v35 = vsel %vm289_vm6, %v133_v29, 0.0 }
   0xe   :  { %v173_v36 = vsel %vm151_vm7, %v169_v32, 0.0  ;;  %v174_v37 = vsel %vm151_vm7, %v170_v33, 0.0  ;;  %v178_v38 = vsel %vm151_vm7, %v171_v34, 0.0  ;;  %v179_v39 = vsel %vm151_vm7, %v172_v35, 0.0 }
   0xf   :  { %v175_v40 = vadd.f32 %v174_v37, %v173_v36  ;;  %v136_v41 = vcombine.low %v129_v28, %v133_v29  ;;  %v180_v42 = vadd.f32 %v179_v39, %v178_v38 }
  0x11   :  { %176 = vadd.xlane.f32.xlu1 %v175_v40  ;;  %v138_v43 = vmul.f32 %v237_v30, %v136_v41  ;;  %v139_v44 = vmul.f32 %v238_v31, %v136_v41 }
  0x13   :  { %v143_v45 = vcombine.high %v138_v43, %v138_v43  ;;  %v147_v46 = vsel %vm277_vm3, %v138_v43, 0.0  ;;  %v144_v47 = vcombine.high %v139_v44, %v139_v44  ;;  %v149_v48 = vsel %vm285_vm5, %v139_v44, 0.0 }
  0x14   :  { %v152_v49 = vsel %vm151_vm7, %v147_v46, 0.0  ;;  %v190_v50 = vmul.f32 %v238_v31, %v139_v44  ;;  %v189_v51 = vmul.f32 %v237_v30, %v138_v43  ;;  %v157_v54 = vsel %vm151_vm7, %v149_v48, 0.0 }
  0x15   :  { %181 = vadd.xlane.f32.xlu1 %v180_v42  ;;  %v148_v52 = vsel %vm281_vm4, %v143_v45, 0.0  ;;  %v150_v53 = vsel %vm289_vm6, %v144_v47, 0.0 }
  0x16   :  { %v153_v55 = vsel %vm151_vm7, %v148_v52, 0.0  ;;  %v158_v56 = vsel %vm151_vm7, %v150_v53, 0.0  ;;  %v194_v57 = vcombine.high %v190_v50, %v190_v50  ;;  %v202_v58 = vsel %vm151_vm7, %v190_v50, 0.0 }
  0x17   :  { %v154_v59 = vadd.f32 %v153_v55, %v152_v49  ;;  %v193_v60 = vcombine.high %v189_v51, %v189_v51  ;;  %v159_v62 = vadd.f32 %v158_v56, %v157_v54  ;;  %v197_v0 = vsel %vm151_vm7, %v189_v51, 0.0 }
  0x18   :  { %v203_v61 = vsel %vm151_vm7, %v194_v57, 0.0 }
  0x19   :  { %155 = vadd.xlane.f32.xlu0 %v154_v59  ;;  %v204_v63 = vadd.f32 %v203_v61, %v202_v58  ;;  %v198_v1 = vsel %vm151_vm7, %v193_v60, 0.0 }
  0x1a   :  { %v199_v2 = vadd.f32 %v198_v1, %v197_v0 }
  0x1b   :  { %205 = vadd.xlane.f32.xlu1 %v204_v63 }
  0x1d   :  { %160 = vadd.xlane.f32.xlu0 %v159_v62 }
  0x21   :  { %200 = vadd.xlane.f32.xlu0 %v199_v2 }
  0x9e   :  { %v177_v3 = vpop.xlane.xlu1 %176 }
  0x9f   :  { %v183_v5 = vsel %vm151_vm7, %v177_v3, 0.0 }
  0xa2   :  { %v182_v6 = vpop.xlane.xlu1 %181 }
  0xa3   :  { %v184_v8 = vsel %vm151_vm7, %v182_v6, 0.0 }
  0xa4   :  { %v185_v9 = vadd.f32 %v184_v8, %v183_v5 }
  0xa6   :  { %v186_v10 = vadd.f32 %v185_v9, %v168_v7  ;;  %v156_v11 = vpop.xlane.xlu0 %155 }
  0xa7   :  { %v162_v13 = vsel %vm151_vm7, %v156_v11, 0.0 }
  0xa8   :  { %187 = vst.msk [vmem:[%s365_s3] sm:$0xf] %vm59_vm8, %v186_v10  ;;  %v206_v4 = vpop.xlane.xlu1 %205 }
  0xa9   :  { %v208_v17 = vsel %vm151_vm7, %v206_v4, 0.0 }
  0xaa   :  { %v161_v12 = vpop.xlane.xlu0 %160 }
  0xab   :  { %v163_v15 = vsel %vm151_vm7, %v161_v12, 0.0 }
  0xac   :  { %v164_v16 = vadd.f32 %v163_v15, %v162_v13 }
  0xae   :  { %v165_v18 = vadd.f32 %v164_v16, %v140_v14  ;;  %v201_v19 = vpop.xlane.xlu0 %200 }
  0xaf   :  { %v207_v21 = vsel %vm151_vm7, %v201_v19, 0.0 }
  0xb0   :  { %167 = vst.msk [vmem:[%s366_s2] sm:$0xf] %vm59_vm8, %v165_v18  ;;  %v209_v22 = vadd.f32 %v208_v17, %v207_v21 }
  0xb2   :  { %v210_v23 = vadd.f32 %v209_v22, %v188_v20 }
  0xb4   :  { %211 = vst.msk [vmem:[%s367_s4] sm:$0xf] %vm59_vm8, %v210_v23 }

</bundles_post_ra>
